<compile_context>
chip_gen: v7x
topology: tpu7x:2x2x1
jax: 0.10.0
libtpu: 0.0.40
codegen_flags: <defaults>
</compile_context>

<pallas_src>
import math

import jax
import jax.numpy as jnp
from jax.experimental import pallas as pl
from jax.experimental.pallas import tpu as pltpu


def _cdiv(a, b):
    return -(-a // b)


def _plan_blocks(B, T, *, target_group_rows=256, max_block_rows=2048, min_grid=2):
    """Choose (G, gpb, block_b, n_blocks, B_pad).

    G        : batch elements packed into one dense attention group (rows=G*T)
    gpb      : attention groups per grid step
    block_b  : batch elements per grid step (= G * gpb)
    n_blocks : grid size
    B_pad    : padded batch size (= n_blocks * block_b)
    """
    G = max(1, min(target_group_rows // max(T, 1), B))
    G8 = _cdiv(G, 8) * 8
    if G8 * T <= target_group_rows:
        G = G8  # 8-aligned sublane slices inside the kernel
    n_groups = _cdiv(B, G)
    max_gpb = max(1, max_block_rows // (G * T))
    n_blocks = max(_cdiv(n_groups, max_gpb), min(min_grid, n_groups))
    gpb = _cdiv(n_groups, n_blocks)
    n_blocks = _cdiv(n_groups, gpb)
    block_b = gpb * G
    # multi-step grids need (8,128)-friendly second-minor block dims
    if n_blocks > 1 and ((block_b % 8) or ((block_b * T) % 16)):
        n_blocks, gpb = 1, n_groups
        block_b = gpb * G
    B_pad = n_blocks * block_b
    return G, gpb, block_b, n_blocks, B_pad


def _make_kernel(*, G, T, gpb, D_model, D_val, D_out):
    GT = G * T

    def kernel(x_ref, kb_ref, w_enc_ref, b_enc_ref, w_qk_ref,
               w_dec_ref, b_dec_ref, out_ref):
        # ---------------- fused encoder (full block: M = gpb*G*T rows) -------
        x = x_ref[...]                                            # (M, D_x) bf16
        enc = (jnp.dot(x, w_enc_ref[...],
                       preferred_element_type=jnp.float32)
               + b_enc_ref[...])                                  # (M, D_model+2*D_val) f32
        shape = jnp.tanh(enc[:, :D_model])                        # f32 (v5e-safe)
        v_all = enc[:, D_model:].astype(jnp.bfloat16)             # (M, 2*D_val) [iv | ev]

        # fused Q/K projection (1/sqrt(D_model) folded into wq by the wrapper)
        qk = jnp.dot(shape.astype(jnp.bfloat16), w_qk_ref[...],
                     preferred_element_type=jnp.float32)          # (M, 2*D_model)
        q_all = qk[:, :D_model].astype(jnp.bfloat16)
        k_all = qk[:, D_model:].astype(jnp.bfloat16)

        # cross-batch additive mask for the packed (GT x GT) attention.
        # rows are time-major within a group (row = t*G + b) -> batch = idx % G
        row_b = jax.lax.broadcasted_iota(jnp.int32, (GT, GT), 0) % G
        col_b = jax.lax.broadcasted_iota(jnp.int32, (GT, GT), 1) % G
        cross_bias = jnp.where(row_b == col_b, 0.0, -1e9).astype(jnp.float32)

        kb_all = kb_ref[0]                                        # (gpb, GT) key bias, f32
        w_dec = w_dec_ref[...]
        b_dec = b_dec_ref[...]

        # ------------- packed, block-diagonally-masked dense attention -------
        for g in range(gpb):                                      # static unroll (gpb small)
            rs = g * GT
            qg = q_all[rs:rs + GT]
            kg = k_all[rs:rs + GT]
            vg = v_all[rs:rs + GT]
            kb = kb_all[g:g + 1, :]                               # (1, GT)

            s = jnp.einsum("qd,kd->qk", qg, kg,
                           preferred_element_type=jnp.float32)    # (GT, GT) f32
            s = s + cross_bias + kb                               # masks added BEFORE row max
            m = jnp.max(s, axis=-1, keepdims=True)
            p = jnp.exp(s - m)                                    # cross-batch/masked -> 0
            denom = jnp.sum(p, axis=-1, keepdims=True)
            attn = (p * pl.reciprocal(denom, approx=True)).astype(jnp.bfloat16)
            # TODO(synk): original AttentionKernel is abstract; inter_score and
            # extra_score share the same softmax attention weights here.

            # attention-weighted sums of [inter_value | extra_value] in one pass
            ctx = jnp.dot(attn, vg,
                          preferred_element_type=jnp.float32)     # (GT, 2*D_val)

            # fused block-diagonal decoder -> [interp | extrap] lanes
            dec = (jnp.dot(ctx.astype(jnp.bfloat16), w_dec,
                           preferred_element_type=jnp.float32)
                   + b_dec)                                       # (GT, 2*D_out)

            # rows are time-major: rows [t*G:(t+1)*G] hold time-step t for all
            # G batch elements -> fold time into lanes (lane-dense store).
            folded = jnp.concatenate(
                [dec[t * G:(t + 1) * G, :] for t in range(T)], axis=1)  # (G, T*2*D_out)
            out_ref[g * G:(g + 1) * G, :] = folded

    return kernel


def attention_block(data, feats, mask, params, *,
                    target_group_rows=256, max_block_rows=2048):
    """data: (B,T,D_in) f32, feats: (B,T,D_feat) f32, mask: (B,T) bool.

    Returns (interp, extrap), each (B, T, D_out) f32.
    """
    B, T, D_in = data.shape
    D_feat = feats.shape[-1]
    D_model = params["wq"].shape[0]
    D_val = params["wiv_d"].shape[1]
    D_out = params["wd"].shape[1]
    D_x = D_in + D_feat
    D_enc = D_model + 2 * D_val

    G, gpb, block_b, n_blocks, B_pad = _plan_blocks(
        B, T, target_group_rows=target_group_rows, max_block_rows=max_block_rows)
    GT = G * T
    M_blk = block_b * T

    cdt = jnp.bfloat16  # MXU-operand dtype (accumulation / elementwise in f32)

    # ---- pack & fuse inputs/parameters once (plain XLA ops outside the kernel) ----
    x = jnp.concatenate([data, feats], axis=-1)                       # (B, T, D_x)
    if B_pad > B:
        x = jnp.pad(x, ((0, B_pad - B), (0, 0), (0, 0)))
    # time-major packing within each attention group: rows ordered [group, t, b]
    x = (x.reshape(B_pad // G, G, T, D_x)
           .transpose(0, 2, 1, 3)
           .reshape(B_pad * T, D_x)
           .astype(cdt))                                              # bf16 at the boundary

    key_bias = jnp.where(mask, 0.0, -1e9).astype(jnp.float32)         # (B, T)
    if B_pad > B:
        key_bias = jnp.pad(key_bias, ((0, B_pad - B), (0, 0)))        # padded = "valid"
    key_bias = (key_bias.reshape(B_pad // G, G, T)
                        .transpose(0, 2, 1)
                        .reshape(n_blocks, gpb, GT))                  # per-group key bias

    w_enc = jnp.concatenate(
        [jnp.concatenate([params["we_d"], params["wiv_d"], params["wev_d"]], axis=1),
         jnp.concatenate([params["we_f"], params["wiv_f"], params["wev_f"]], axis=1)],
        axis=0).astype(cdt)                                           # (D_x, D_enc)
    b_enc = jnp.concatenate([params["be"], params["biv"], params["bev"]],
                            axis=1).astype(jnp.float32)               # (1, D_enc)
    w_qk = jnp.concatenate([params["wq"] / math.sqrt(D_model), params["wk"]],
                           axis=1).astype(cdt)                        # (D_model, 2*D_model)
    w_dec = jnp.zeros((2 * D_val, 2 * D_out), jnp.float32)
    w_dec = (w_dec.at[:D_val, :D_out].set(params["wd"])
                  .at[D_val:, D_out:].set(params["wd"])).astype(cdt)  # block-diag wd
    b_dec = jnp.concatenate([params["bd"], params["bd"]], axis=1).astype(jnp.float32)

    kernel = _make_kernel(G=G, T=T, gpb=gpb,
                          D_model=D_model, D_val=D_val, D_out=D_out)

    def wspec(shape):
        return pl.BlockSpec(shape, lambda b: (0,) * len(shape))

    out = pl.pallas_call(
        kernel,
        grid=(n_blocks,),
        in_specs=[
            pl.BlockSpec((M_blk, D_x), lambda b: (b, 0)),      # [data | feats], bf16
            pl.BlockSpec((1, gpb, GT), lambda b: (b, 0, 0)),   # per-group key-mask bias
            wspec((D_x, D_enc)),                               # fused encoder weight
            wspec((1, D_enc)),                                 # fused encoder bias
            wspec((D_model, 2 * D_model)),                     # fused [wq*scale | wk]
            wspec((2 * D_val, 2 * D_out)),                     # block-diag decoder weight
            wspec((1, 2 * D_out)),                             # fused decoder bias
        ],
        out_specs=pl.BlockSpec((block_b, T * 2 * D_out), lambda b: (b, 0)),
        out_shape=jax.ShapeDtypeStruct((B_pad, T * 2 * D_out), jnp.float32),
        compiler_params=pltpu.CompilerParams(
            dimension_semantics=("parallel",),
            vmem_limit_bytes=32 * 1024 * 1024),
    )(x, key_bias, w_enc, b_enc, w_qk, w_dec, b_dec)

    # rows = original batch order; lanes = [t][interp | extrap]
    out = out[:B].reshape(B, T, 2 * D_out)
    return out[..., :D_out], out[..., D_out:]


def attention_block_ref(data, feats, mask, params):
    """Pure-JAX (f32) reference for correctness checking."""
    shape = jnp.tanh(data @ params["we_d"] + feats @ params["we_f"] + params["be"])
    inter_value = data @ params["wiv_d"] + feats @ params["wiv_f"] + params["biv"]
    extra_value = data @ params["wev_d"] + feats @ params["wev_f"] + params["bev"]
    q = shape @ params["wq"]
    k = shape @ params["wk"]
    scores = jnp.einsum("btd,bsd->bts", q, k) / math.sqrt(q.shape[-1])
    scores = scores + jnp.where(mask, 0.0, -1e9)[:, None, :]
    attn = jax.nn.softmax(scores, axis=-1)
    interp = jnp.einsum("bts,bsd->btd", attn, inter_value) @ params["wd"] + params["bd"]
    extrap = jnp.einsum("bts,bsd->btd", attn, extra_value) @ params["wd"] + params["bd"]
    return interp, extrap


def make_params(key, D_in, D_feat, D_model, D_val, D_out):
    keys = jax.random.split(key, 10)
    s = 0.1
    return {
        "we_d": s * jax.random.normal(keys[0], (D_in, D_model), jnp.float32),
        "we_f": s * jax.random.normal(keys[1], (D_feat, D_model), jnp.float32),
        "be": s * jax.random.normal(keys[2], (1, D_model), jnp.float32),
        "wiv_d": s * jax.random.normal(keys[3], (D_in, D_val), jnp.float32),
        "wiv_f": s * jax.random.normal(keys[4], (D_feat, D_val), jnp.float32),
        "biv": jnp.zeros((1, D_val), jnp.float32),
        "wev_d": s * jax.random.normal(keys[5], (D_in, D_val), jnp.float32),
        "wev_f": s * jax.random.normal(keys[6], (D_feat, D_val), jnp.float32),
        "bev": jnp.zeros((1, D_val), jnp.float32),
        "wq": s * jax.random.normal(keys[7], (D_model, D_model), jnp.float32),
        "wk": s * jax.random.normal(keys[8], (D_model, D_model), jnp.float32),
        "wd": s * jax.random.normal(keys[9], (D_val, D_out), jnp.float32),
        "bd": jnp.zeros((1, D_out), jnp.float32),
    }


if __name__ == "__main__":
    B, T = 2, 8
    D_in, D_feat, D_model, D_val, D_out = 16, 4, 32, 32, 16

    key = jax.random.PRNGKey(0)
    k_data, k_feats, k_par = jax.random.split(key, 3)

    data = jax.random.normal(k_data, (B, T, D_in), jnp.float32)
    feats = jax.random.normal(k_feats, (B, T, D_feat), jnp.float32)
    # mask: True = observed / attendable; second batch element masks last 2 steps
    mask = jnp.ones((B, T), dtype=bool).at[1, -2:].set(False)

    params = make_params(k_par, D_in, D_feat, D_model, D_val, D_out)

    interp, extrap = attention_block(data, feats, mask, params)
    jax.block_until_ready((interp, extrap))

    interp_ref, extrap_ref = attention_block_ref(data, feats, mask, params)
    # bf16 MXU operands + approx reciprocal vs the pure-f32 reference.
    assert jnp.allclose(interp, interp_ref, atol=3e-2, rtol=3e-2), float(
        jnp.max(jnp.abs(interp - interp_ref)))
    assert jnp.allclose(extrap, extrap_ref, atol=3e-2, rtol=3e-2), float(
        jnp.max(jnp.abs(extrap - extrap_ref)))

    print("KERNEL_OK")
</pallas_src>

<mosaic_0001>
module attributes {stable_mosaic.version = 11 : i64} {
  func.func @kernel(%arg0: i32, %arg1: memref<64x20xbf16, #tpu.memory_space<vmem>>, %arg2: memref<1x1x64xf32, #tpu.memory_space<vmem>>, %arg3: memref<20x96xbf16, #tpu.memory_space<vmem>>, %arg4: memref<1x96xf32, #tpu.memory_space<vmem>>, %arg5: memref<32x64xbf16, #tpu.memory_space<vmem>>, %arg6: memref<64x32xbf16, #tpu.memory_space<vmem>>, %arg7: memref<1x32xf32, #tpu.memory_space<vmem>>, %arg8: memref<8x256xf32, #tpu.memory_space<vmem>>) attributes {dimension_semantics = [#tpu.dimension_semantics<parallel>], iteration_bounds = array<i64: 1>, scalar_prefetch = 0 : i64, scratch_operands = 0 : i64, tpu.core_type = #tpu.core_type<tc>, window_params = [{transform_indices = @transform_0, window_bounds = array<i64: 64, 20>}, {transform_indices = @transform_1, window_bounds = array<i64: 1, 1, 64>}, {pipeline_mode = #tpu.pipeline_mode<synchronous>, transform_indices = @transform_2, window_bounds = array<i64: 20, 96>}, {pipeline_mode = #tpu.pipeline_mode<synchronous>, transform_indices = @transform_3, window_bounds = array<i64: 1, 96>}, {pipeline_mode = #tpu.pipeline_mode<synchronous>, transform_indices = @transform_4, window_bounds = array<i64: 32, 64>}, {pipeline_mode = #tpu.pipeline_mode<synchronous>, transform_indices = @transform_5, window_bounds = array<i64: 64, 32>}, {pipeline_mode = #tpu.pipeline_mode<synchronous>, transform_indices = @transform_6, window_bounds = array<i64: 1, 32>}, {transform_indices = @transform_7, window_bounds = array<i64: 8, 256>}]} {
    %c0 = arith.constant 0 : index
    %c0_0 = arith.constant 0 : index
    %0 = vector.load %arg1[%c0, %c0_0] : memref<64x20xbf16, #tpu.memory_space<vmem>>, vector<64x20xbf16>
    %c0_1 = arith.constant 0 : index
    %c0_2 = arith.constant 0 : index
    %1 = vector.load %arg3[%c0_1, %c0_2] : memref<20x96xbf16, #tpu.memory_space<vmem>>, vector<20x96xbf16>
    %cst = arith.constant dense<0.000000e+00> : vector<64x96xf32>
    %2 = tpu.matmul %0, %1, %cst {dimension_numbers = #tpu.dot_dimension_numbers<[1], [0], [0], [1], [0, 0, 1, 1], [], []>} : vector<64x20xbf16>, vector<20x96xbf16>, vector<64x96xf32> -> vector<64x96xf32>
    %c0_3 = arith.constant 0 : index
    %c0_4 = arith.constant 0 : index
    %3 = vector.load %arg4[%c0_3, %c0_4] : memref<1x96xf32, #tpu.memory_space<vmem>>, vector<1x96xf32>
    %4 = vector.broadcast %3 : vector<1x96xf32> to vector<64x96xf32>
    %5 = arith.addf %2, %4 : vector<64x96xf32>
    %6 = vector.extract_strided_slice %5 {offsets = [0, 0], sizes = [64, 32], strides = [1, 1]} : vector<64x96xf32> to vector<64x32xf32>
    %7 = math.tanh %6 : vector<64x32xf32>
    %8 = vector.extract_strided_slice %5 {offsets = [0, 32], sizes = [64, 64], strides = [1, 1]} : vector<64x96xf32> to vector<64x64xf32>
    %9 = arith.truncf %8 : vector<64x64xf32> to vector<64x64xbf16>
    %10 = arith.truncf %7 : vector<64x32xf32> to vector<64x32xbf16>
    %c0_5 = arith.constant 0 : index
    %c0_6 = arith.constant 0 : index
    %11 = vector.load %arg5[%c0_5, %c0_6] : memref<32x64xbf16, #tpu.memory_space<vmem>>, vector<32x64xbf16>
    %cst_7 = arith.constant dense<0.000000e+00> : vector<64x64xf32>
    %12 = tpu.matmul %10, %11, %cst_7 {dimension_numbers = #tpu.dot_dimension_numbers<[1], [0], [0], [1], [0, 0, 1, 1], [], []>} : vector<64x32xbf16>, vector<32x64xbf16>, vector<64x64xf32> -> vector<64x64xf32>
    %13 = vector.extract_strided_slice %12 {offsets = [0, 0], sizes = [64, 32], strides = [1, 1]} : vector<64x64xf32> to vector<64x32xf32>
    %14 = arith.truncf %13 : vector<64x32xf32> to vector<64x32xbf16>
    %15 = vector.extract_strided_slice %12 {offsets = [0, 32], sizes = [64, 32], strides = [1, 1]} : vector<64x64xf32> to vector<64x32xf32>
    %16 = arith.truncf %15 : vector<64x32xf32> to vector<64x32xbf16>
    %17 = tpu.iota {dimensions = array<i32: 0>} : vector<64x64xi32>
    %c8_i32 = arith.constant 8 : i32
    %c0_i32 = arith.constant 0 : i32
    %18 = arith.cmpi eq, %c8_i32, %c0_i32 : i32
    %c1_i32 = arith.constant 1 : i32
    %19 = arith.select %18, %c1_i32, %c8_i32 : i32
    %20 = vector.broadcast %19 : i32 to vector<64x64xi32>
    %21 = arith.remsi %17, %20 : vector<64x64xi32>
    %c0_i32_8 = arith.constant 0 : i32
    %22 = vector.broadcast %c0_i32_8 : i32 to vector<64x64xi32>
    %23 = arith.cmpi ne, %21, %22 : vector<64x64xi32>
    %c0_i32_9 = arith.constant 0 : i32
    %24 = vector.broadcast %c0_i32_9 : i32 to vector<64x64xi32>
    %25 = arith.cmpi slt, %21, %24 : vector<64x64xi32>
    %c0_i32_10 = arith.constant 0 : i32
    %26 = arith.cmpi slt, %19, %c0_i32_10 : i32
    %27 = vector.broadcast %26 : i1 to vector<64x64xi1>
    %28 = vector.broadcast %27 : vector<64x64xi1> to vector<64x64xi1>
    %29 = arith.xori %25, %28 : vector<64x64xi1>
    %30 = arith.andi %29, %23 : vector<64x64xi1>
    %31 = vector.broadcast %19 : i32 to vector<64x64xi32>
    %32 = arith.addi %21, %31 : vector<64x64xi32>
    %33 = arith.select %30, %32, %21 : vector<64x64xi1>, vector<64x64xi32>
    %34 = tpu.iota {dimensions = array<i32: 1>} : vector<64x64xi32>
    %c8_i32_11 = arith.constant 8 : i32
    %c0_i32_12 = arith.constant 0 : i32
    %35 = arith.cmpi eq, %c8_i32_11, %c0_i32_12 : i32
    %c1_i32_13 = arith.constant 1 : i32
    %36 = arith.select %35, %c1_i32_13, %c8_i32_11 : i32
    %37 = vector.broadcast %36 : i32 to vector<64x64xi32>
    %38 = arith.remsi %34, %37 : vector<64x64xi32>
    %c0_i32_14 = arith.constant 0 : i32
    %39 = vector.broadcast %c0_i32_14 : i32 to vector<64x64xi32>
    %40 = arith.cmpi ne, %38, %39 : vector<64x64xi32>
    %c0_i32_15 = arith.constant 0 : i32
    %41 = vector.broadcast %c0_i32_15 : i32 to vector<64x64xi32>
    %42 = arith.cmpi slt, %38, %41 : vector<64x64xi32>
    %c0_i32_16 = arith.constant 0 : i32
    %43 = arith.cmpi slt, %36, %c0_i32_16 : i32
    %44 = vector.broadcast %43 : i1 to vector<64x64xi1>
    %45 = vector.broadcast %44 : vector<64x64xi1> to vector<64x64xi1>
    %46 = arith.xori %42, %45 : vector<64x64xi1>
    %47 = arith.andi %46, %40 : vector<64x64xi1>
    %48 = vector.broadcast %36 : i32 to vector<64x64xi32>
    %49 = arith.addi %38, %48 : vector<64x64xi32>
    %50 = arith.select %47, %49, %38 : vector<64x64xi1>, vector<64x64xi32>
    %51 = arith.cmpi eq, %33, %50 : vector<64x64xi32>
    %cst_17 = arith.constant 0.000000e+00 : f32
    %cst_18 = arith.constant -1.000000e+09 : f32
    %52 = vector.broadcast %cst_17 : f32 to vector<64x64xf32>
    %53 = vector.broadcast %cst_18 : f32 to vector<64x64xf32>
    %54 = arith.select %51, %52, %53 : vector<64x64xi1>, vector<64x64xf32>
    %c0_19 = arith.constant 0 : index
    %c0_20 = arith.constant 0 : index
    %c0_21 = arith.constant 0 : index
    %55 = vector.load %arg2[%c0_19, %c0_20, %c0_21] : memref<1x1x64xf32, #tpu.memory_space<vmem>>, vector<1x1x64xf32>
    %56 = vector.shape_cast %55 : vector<1x1x64xf32> to vector<1x64xf32>
    %c0_22 = arith.constant 0 : index
    %c0_23 = arith.constant 0 : index
    %57 = vector.load %arg6[%c0_22, %c0_23] : memref<64x32xbf16, #tpu.memory_space<vmem>>, vector<64x32xbf16>
    %c0_24 = arith.constant 0 : index
    %c0_25 = arith.constant 0 : index
    %58 = vector.load %arg7[%c0_24, %c0_25] : memref<1x32xf32, #tpu.memory_space<vmem>>, vector<1x32xf32>
    "tpu.trace_start"() <{level = 10 : i32, message = "qd,kd->qk"}> : () -> ()
    %cst_26 = arith.constant dense<0.000000e+00> : vector<64x64xf32>
    %59 = tpu.matmul %14, %16, %cst_26 {dimension_numbers = #tpu.dot_dimension_numbers<[1], [1], [0], [0], [0, 0, 1, 0], [], []>} : vector<64x32xbf16>, vector<64x32xbf16>, vector<64x64xf32> -> vector<64x64xf32>
    "tpu.trace_stop"() : () -> ()
    %60 = arith.addf %59, %54 : vector<64x64xf32>
    %61 = vector.broadcast %56 : vector<1x64xf32> to vector<64x64xf32>
    %62 = arith.addf %60, %61 : vector<64x64xf32>
    %cst_27 = arith.constant dense<0xFF800000> : vector<64xf32>
    %63 = vector.multi_reduction <maximumf>, %62, %cst_27 [1] : vector<64x64xf32> to vector<64xf32>
    %64 = vector.shape_cast %63 : vector<64xf32> to vector<64x1xf32>
    %65 = vector.broadcast %64 : vector<64x1xf32> to vector<64x64xf32>
    %66 = arith.subf %62, %65 : vector<64x64xf32>
    %67 = math.exp %66 : vector<64x64xf32>
    %cst_28 = arith.constant dense<0.000000e+00> : vector<64xf32>
    %68 = vector.multi_reduction <add>, %67, %cst_28 [1] : vector<64x64xf32> to vector<64xf32>
    %69 = vector.shape_cast %68 : vector<64xf32> to vector<64x1xf32>
    %70 = tpu.reciprocal %69 {approx = true} : vector<64x1xf32> -> vector<64x1xf32>
    %71 = vector.broadcast %70 : vector<64x1xf32> to vector<64x64xf32>
    %72 = arith.mulf %67, %71 : vector<64x64xf32>
    %73 = arith.truncf %72 : vector<64x64xf32> to vector<64x64xbf16>
    %cst_29 = arith.constant dense<0.000000e+00> : vector<64x64xf32>
    %74 = tpu.matmul %73, %9, %cst_29 {dimension_numbers = #tpu.dot_dimension_numbers<[1], [0], [0], [1], [0, 0, 1, 1], [], []>} : vector<64x64xbf16>, vector<64x64xbf16>, vector<64x64xf32> -> vector<64x64xf32>
    %75 = arith.truncf %74 : vector<64x64xf32> to vector<64x64xbf16>
    %cst_30 = arith.constant dense<0.000000e+00> : vector<64x32xf32>
    %76 = tpu.matmul %75, %57, %cst_30 {dimension_numbers = #tpu.dot_dimension_numbers<[1], [0], [0], [1], [0, 0, 1, 1], [], []>} : vector<64x64xbf16>, vector<64x32xbf16>, vector<64x32xf32> -> vector<64x32xf32>
    %77 = vector.broadcast %58 : vector<1x32xf32> to vector<64x32xf32>
    %78 = arith.addf %76, %77 : vector<64x32xf32>
    %79 = vector.extract_strided_slice %78 {offsets = [0, 0], sizes = [8, 32], strides = [1, 1]} : vector<64x32xf32> to vector<8x32xf32>
    %80 = vector.extract_strided_slice %78 {offsets = [8, 0], sizes = [8, 32], strides = [1, 1]} : vector<64x32xf32> to vector<8x32xf32>
    %81 = vector.extract_strided_slice %78 {offsets = [16, 0], sizes = [8, 32], strides = [1, 1]} : vector<64x32xf32> to vector<8x32xf32>
    %82 = vector.extract_strided_slice %78 {offsets = [24, 0], sizes = [8, 32], strides = [1, 1]} : vector<64x32xf32> to vector<8x32xf32>
    %83 = vector.extract_strided_slice %78 {offsets = [32, 0], sizes = [8, 32], strides = [1, 1]} : vector<64x32xf32> to vector<8x32xf32>
    %84 = vector.extract_strided_slice %78 {offsets = [40, 0], sizes = [8, 32], strides = [1, 1]} : vector<64x32xf32> to vector<8x32xf32>
    %85 = vector.extract_strided_slice %78 {offsets = [48, 0], sizes = [8, 32], strides = [1, 1]} : vector<64x32xf32> to vector<8x32xf32>
    %86 = vector.extract_strided_slice %78 {offsets = [56, 0], sizes = [8, 32], strides = [1, 1]} : vector<64x32xf32> to vector<8x32xf32>
    %87 = tpu.concatenate %79, %80, %81, %82, %83, %84, %85, %86 in 1 : vector<8x32xf32>, vector<8x32xf32>, vector<8x32xf32>, vector<8x32xf32>, vector<8x32xf32>, vector<8x32xf32>, vector<8x32xf32>, vector<8x32xf32> -> vector<8x256xf32>
    %c0_31 = arith.constant 0 : index
    %c0_32 = arith.constant 0 : index
    %88 = vector.load %arg8[%c0_31, %c0_32] : memref<8x256xf32, #tpu.memory_space<vmem>>, vector<8x256xf32>
    tpu.vector_store %arg8[%c0_31, %c0_32], %87 {strides = array<i32>} : memref<8x256xf32, #tpu.memory_space<vmem>>, vector<8x256xf32>,
    return
  }
  func.func @transform_0(%arg0: i32) -> (i32, i32) {
    %c0_i32 = arith.constant 0 : i32
    %c0_i32_0 = arith.constant 0 : i32
    return %arg0, %c0_i32 : i32, i32
  }
  func.func @transform_1(%arg0: i32) -> (i32, i32, i32) {
    %c0_i32 = arith.constant 0 : i32
    %c0_i32_0 = arith.constant 0 : i32
    %c0_i32_1 = arith.constant 0 : i32
    return %arg0, %c0_i32, %c0_i32_0 : i32, i32, i32
  }
  func.func @transform_2(%arg0: i32) -> (i32, i32) {
    %c0_i32 = arith.constant 0 : i32
    %c0_i32_0 = arith.constant 0 : i32
    %c0_i32_1 = arith.constant 0 : i32
    return %c0_i32, %c0_i32_0 : i32, i32
  }
  func.func @transform_3(%arg0: i32) -> (i32, i32) {
    %c0_i32 = arith.constant 0 : i32
    %c0_i32_0 = arith.constant 0 : i32
    %c0_i32_1 = arith.constant 0 : i32
    return %c0_i32, %c0_i32_0 : i32, i32
  }
  func.func @transform_4(%arg0: i32) -> (i32, i32) {
    %c0_i32 = arith.constant 0 : i32
    %c0_i32_0 = arith.constant 0 : i32
    %c0_i32_1 = arith.constant 0 : i32
    return %c0_i32, %c0_i32_0 : i32, i32
  }
  func.func @transform_5(%arg0: i32) -> (i32, i32) {
    %c0_i32 = arith.constant 0 : i32
    %c0_i32_0 = arith.constant 0 : i32
    %c0_i32_1 = arith.constant 0 : i32
    return %c0_i32, %c0_i32_0 : i32, i32
  }
  func.func @transform_6(%arg0: i32) -> (i32, i32) {
    %c0_i32 = arith.constant 0 : i32
    %c0_i32_0 = arith.constant 0 : i32
    %c0_i32_1 = arith.constant 0 : i32
    return %c0_i32, %c0_i32_0 : i32, i32
  }
  func.func @transform_7(%arg0: i32) -> (i32, i32) {
    %c0_i32 = arith.constant 0 : i32
    %c0_i32_0 = arith.constant 0 : i32
    return %arg0, %c0_i32 : i32, i32
  }
}

</mosaic_0001>

<bundles_post_ra>
// kernel: tpu_custom_call.1
= control target key start
LH: loop header
LB: loop body
LE: loop exit
PB: predicated region body
PF: predicated region fallthrough
CT: control target
= control target key end

     0   :  { %vm88_vm0 = vcmask 1041408   ;;  %vm75_vm1 = vcmask 162816   ;;  %s1320_s0 = inlined_call_operand.vmem [shape: bf16[64,20], index: 0, kind: input, shape index: {}]   ;;  %s1321_s1 = inlined_call_operand.vmem [shape: f32[1,1,64], index: 1, kind: input, shape index: {}]   ;;  %s1322_s2 = inlined_call_operand.vmem [shape: bf16[20,96], index: 2, kind: input, shape index: {}]   ;;  %s1323_s3 = inlined_call_operand.vmem [shape: f32[1,96], index: 3, kind: input, shape index: {}]   ;;  %s1324_s4 = inlined_call_operand.vmem [shape: bf16[32,64], index: 4, kind: input, shape index: {}]   ;;  %s1325_s5 = inlined_call_operand.vmem [shape: bf16[64,32], index: 5, kind: input, shape index: {}]   ;;  %s1326_s6 = inlined_call_operand.vmem [shape: f32[1,32], index: 6, kind: input, shape index: {}]   ;;  %s1327_s7 = inlined_call_operand.hbm [shape: f32[8,256], index: 7, kind: output, shape index: {}]  }
   0x1   :  { %v1028_v0 = vld [vmem:[%s1322_s2] sm:$0xff]   ;;  %v1029_v1 = vld [vmem:[%s1322_s2 + $0x8] ss:$0 sps:$4 sm:$0x33]   ;;  %v1032_v5 = vld [vmem:[%s1320_s0 + $0x10] sm:$0xff]  }
   0x2   :  { %v1030_v2 = vld [vmem:[%s1320_s0] sm:$0xff]   ;;  %946 = vmatprep.subr.bf16.mxu0 %v1028_v0  ;;  %v90_v3 = vsel %vm88_vm0, %v1029_v1, 0  ;;  %v1031_v4 = vld [vmem:[%s1320_s0 + $0x8] sm:$0xff]  }
   0x3   :  { %947 = vmatpush3.bf16.msra.mxu0 %v1028_v0  ;;  %950 = vmatprep.mubr.msk.bf16.mxu0 %vm75_vm1, %v1030_v2 }
   0x4   :  { %1018 = vmatprep.subr.msk.bf16.mxu0 %vm88_vm0, %v1029_v1 }
   0x7   :  { %949 = vmatpush3.bf16.msra.mxu0 %v90_v3 }
   0x8   :  { %12 = vsyncpa [#allocation3], 0  ;;  %v1033_v6 = vld [vmem:[%s1320_s0 + $0x18] sm:$0xff]   ;;  %v1034_v7 = vld [vmem:[%s1324_s4] sm:$0xff]   ;;  %vm189_vm2 = vcmask 261120   ;;  %s1112_s0 = smov 96   ;;  %v271_v62 = vlaneseq }
   0x9   :  { %958 = vmatprep.subr.bf16.mxu1 %v1034_v7  ;;  %v1035_v8 = vld [vmem:[%s1324_s4 + $0x8] sm:$0xff]   ;;  %v875_v9 = vld [vmem:[%s1323_s3] ss:$0 sm:$0xff]  ;;  %vm531_vm7 = vcmask 523264   ;;  %s1114_s26 = smov 64   ;;  %s1115_s27 = smov 32  }
   0xa   :  { %951 = vmatmul.mubr.msk.bf16.vlgmr.msra.gmra.mrb[0].mxu0 %vm75_vm1, %v1031_v4  ;;  %959 = vmatpush3.bf16.msra.mxu1 %v1034_v7  ;;  %v272_v63 = vshrl.u32 %v271_v62, 7  ;;  %v377_v1 = vand.u32 127, %v271_v62  ;;  %vm854_vm12 = vcmask 785408  }
   0xb   :  { %954 = vmatprep.mubr.msk.bf16.mxu0 %vm75_vm1, %v1032_v5  ;;  %960 = vmatprep.subr.bf16.mxu1 %v1035_v8 }
   0xc   :  { %v274_v0 = vadd.s32 16, %v272_v63  ;;  %v273_v2 = vadd.s32 8, %v272_v63  ;;  %v275_v3 = vadd.s32 24, %v272_v63  ;;  %v382_v5 = vand.u32 7, %v377_v1 }
   0xe   :  { %961 = vmatpush3.bf16.msra.mxu1 %v1035_v8  ;;  %v298_v4 = vand.u32 7, %v274_v0  ;;  %v291_v7 = vand.u32 7, %v273_v2  ;;  %v305_v8 = vand.u32 7, %v275_v3 }
  0x10   :  { %vm392_vm3 = vcmp.eq.s32.totalorder %v298_v4, %v382_v5  ;;  %vm391_vm5 = vcmp.eq.s32.totalorder %v291_v7, %v382_v5  ;;  %vm393_vm6 = vcmp.eq.s32.totalorder %v305_v8, %v382_v5 }
  0x12   :  { %955 = vmatmul.mubr.msk.bf16.gmra.mrb[4].mxu0 %vm75_vm1, %v1033_v6  ;;  %v284_v6 = vand.u32 7, %v272_v63 }
  0x14   :  { %vm390_vm4 = vcmp.eq.s32.totalorder %v284_v6, %v382_v5 }
  0xdd   :  { %v952_v10 = vpop.f32.mrb[0].mxu0 }
  0xde   :  { %v1184_v11 = vadd.f32 %v952_v10, %v875_v9  ;;  %v126_v12 = vpop.f32.mrb[1].mxu0  ;;  %v276_v10 = vadd.s32 32, %v272_v63 }
  0xdf   :  { %v1186_v13 = vadd.f32 %v875_v9, %v126_v12  ;;  %v953_v14 = vpop.f32.mrb[2].mxu0  ;;  %v277_v12 = vadd.s32 40, %v272_v63 }
  0xe0   :  { %1040 = vtanh.f32 %v1184_v11  ;;  %v1189_v15 = vadd.f32 %v953_v14, %v875_v9  ;;  %v129_v16 = vpop.f32.mrb[3].mxu0  ;;  %v1113_v14 = vmov -1e+09  }
  0xe1   :  { %1042 = vtanh.f32 %v1186_v13  ;;  %v1192_v17 = vadd.f32 %v875_v9, %v129_v16  ;;  %v400_v16 = vsel %vm392_vm3, 0.0, %v1113_v14 }
  0xe2   :  { %1044 = vtanh.f32 %v1189_v15  ;;  %v166_v18 = vpack.c.bf16 %v1189_v15, %v1184_v11 }
  0xe3   :  { %1046 = vtanh.f32 %v1192_v17  ;;  %v165_v19 = vpack.c.bf16 %v1192_v17, %v1186_v13 }
  0xe5   :  { %v956_v20 = vpop.f32.mrb[4].mxu0 }
  0xe6   :  { %v1200_v21 = vadd.f32 %v956_v20, %v875_v9  ;;  %v142_v22 = vpop.f32.mrb[5].mxu0  ;;  %v398_v20 = vsel %vm390_vm4, 0.0, %v1113_v14 }
  0xe7   :  { %v1202_v23 = vadd.f32 %v875_v9, %v142_v22  ;;  %v957_v24 = vpop.f32.mrb[6].mxu0 }
  0xe8   :  { %1048 = vtanh.f32 %v1200_v21  ;;  %v1205_v25 = vadd.f32 %v957_v24, %v875_v9  ;;  %v145_v26 = vpop.f32.mrb[7].mxu0 }
  0xe9   :  { %1050 = vtanh.f32 %v1202_v23  ;;  %v1208_v27 = vadd.f32 %v875_v9, %v145_v26  ;;  %v278_v9 = vadd.s32 48, %v272_v63  ;;  %v312_v26 = vand.u32 7, %v276_v10 }
  0xea   :  { %v1041_v28 = vpop.eup %1040  ;;  %1052 = vtanh.f32 %v1205_v25  ;;  %v168_v29 = vpack.c.bf16 %v1205_v25, %v1200_v21 }
  0xeb   :  { %v1043_v30 = vpop.eup %1042  ;;  %1054 = vtanh.f32 %v1208_v27  ;;  %v167_v31 = vpack.c.bf16 %v1208_v27, %v1202_v23  ;;  %v326_v22 = vand.u32 7, %v278_v9  ;;  %vm394_vm9 = vcmp.eq.s32.totalorder %v312_v26, %v382_v5 }
  0xec   :  { %v1045_v32 = vpop.eup %1044 }
  0xed   :  { %v1047_v33 = vpop.eup %1046  ;;  %v170_v34 = vpack.c.bf16 %v1045_v32, %v1041_v28  ;;  %v279_v28 = vadd.s32 56, %v272_v63  ;;  %v399_v32 = vsel %vm391_vm5, 0.0, %v1113_v14  ;;  %vm396_vm8 = vcmp.eq.s32.totalorder %v326_v22, %v382_v5 }
  0xee   :  { %v169_v35 = vpack.c.bf16 %v1047_v33, %v1043_v30  ;;  %v896_v33 = vld [vmem:[%s1321_s1] ss:$0 sm:$0xff] }
  0xf0   :  { %962 = vmatprep.mubr.msk.bf16.mxu1 %vm189_vm2, %v169_v35 }
  0xf1   :  { %963 = vmatmul.mubr.msk.bf16.vlgmr.msra.gmra.mrb[0].mxu1 %vm189_vm2, %v170_v34 }
  0xf2   :  { %v1049_v36 = vpop.eup %1048 }
  0xf3   :  { %v1051_v37 = vpop.eup %1050 }
  0xf4   :  { %v1053_v38 = vpop.eup %1052 }
  0xf5   :  { %v1055_v39 = vpop.eup %1054  ;;  %v172_v40 = vpack.c.bf16 %v1053_v38, %v1049_v36  ;;  %v401_v36 = vsel %vm393_vm6, 0.0, %v1113_v14  ;;  %v319_v38 = vand.u32 7, %v277_v12 }
  0xf6   :  { %v171_v41 = vpack.c.bf16 %v1055_v39, %v1051_v37 }
  0xf7   :  { %vm395_vm10 = vcmp.eq.s32.totalorder %v319_v38, %v382_v5 }
  0xf8   :  { %966 = vmatprep.mubr.msk.bf16.mxu1 %vm189_vm2, %v171_v41 }
  0xf9   :  { %967 = vmatmul.mubr.msk.bf16.gmra.mrb[4].mxu1 %vm189_vm2, %v172_v40 }
 0x1c4   :  { %v964_v42 = vpop.f32.mrb[0].mxu1 }
 0x1c5   :  { %v236_v43 = vpop.f32.mrb[1].mxu1 }
 0x1c6   :  { %v965_v44 = vpop.f32.mrb[2].mxu1 }
 0x1c7   :  { %v268_v45 = vpack.c.bf16 %v965_v44, %v964_v42  ;;  %v239_v46 = vpop.f32.mrb[3].mxu1  ;;  %v333_v42 = vand.u32 7, %v279_v28 }
 0x1c8   :  { %v267_v47 = vpack.c.bf16 %v239_v46, %v236_v43 }
 0x1c9   :  { %vm397_vm11 = vcmp.eq.s32.totalorder %v333_v42, %v382_v5 }
 0x1ca   :  { %420 = vrot.lane.b32.xlu0 %v267_v47, %s1112_s0  ;;  %978 = vmatprep.mubr.msk.bf16.mxu0 %vm189_vm2, %v267_v47  ;;  %v404_v47 = vsel %vm396_vm8, 0.0, %v1113_v14 }
 0x1cc   :  { %v968_v48 = vpop.f32.mrb[4].mxu1 }
 0x1cd   :  { %v252_v49 = vpop.f32.mrb[5].mxu1 }
 0x1ce   :  { %422 = vrot.lane.b32.xlu0 %v268_v45, %s1112_s0  ;;  %v969_v50 = vpop.f32.mrb[6].mxu1 }
 0x1cf   :  { %v270_v51 = vpack.c.bf16 %v969_v50, %v968_v48  ;;  %v255_v52 = vpop.f32.mrb[7].mxu1  ;;  %v402_v48 = vsel %vm394_vm9, 0.0, %v1113_v14 }
 0x1d0   :  { %v269_v53 = vpack.c.bf16 %v255_v52, %v252_v49  ;;  %v403_v52 = vsel %vm395_vm10, 0.0, %v1113_v14 }
 0x1d2   :  { %424 = vrot.lane.b32.xlu1 %v269_v53, %s1112_s0 }
 0x1d6   :  { %426 = vrot.lane.b32.xlu1 %v270_v51, %s1112_s0 }
 0x23c   :  { %v421_v54 = vpop.permute.xlu0 %420 }
 0x23d   :  { %v441_v55 = vsel %vm189_vm2, %v421_v54, 0  ;;  %1019 = vmatprep.subr.msk.bf16.mxu0 %vm189_vm2, %v421_v54 }
 0x23e   :  { %971 = vmatpush3.bf16.xpose.msra.mxu0 %v441_v55 }
 0x240   :  { %v423_v56 = vpop.permute.xlu0 %422 }
 0x241   :  { %1020 = vmatprep.subr.msk.bf16.mxu0 %vm189_vm2, %v423_v56  ;;  %v444_v57 = vsel %vm189_vm2, %v423_v56, 0 }
 0x244   :  { %v425_v58 = vpop.permute.xlu1 %424 }
 0x245   :  { %v447_v59 = vsel %vm189_vm2, %v425_v58, 0 }
 0x246   :  { %973 = vmatpush3.bf16.xpose.msra.mxu0 %v444_v57 }
 0x247   :  { %1021 = vmatprep.subr.msk.bf16.mxu0 %vm189_vm2, %v425_v58  ;;  %v405_v58 = vsel %vm397_vm11, 0.0, %v1113_v14 }
 0x248   :  { %v427_v60 = vpop.permute.xlu1 %426 }
 0x249   :  { %v450_v61 = vsel %vm189_vm2, %v427_v60, 0 }
 0x24e   :  { %975 = vmatpush3.bf16.xpose.msra.mxu0 %v447_v59 }
 0x24f   :  { %1022 = vmatprep.subr.msk.bf16.mxu0 %vm189_vm2, %v427_v60 }
 0x256   :  { %977 = vmatpush3.bf16.xpose.msra.mxu0 %v450_v61 }
 0x25d   :  { %979 = vmatmul.mubr.msk.bf16.vlgmr.msra.gmra.mrb[8].mxu0 %vm189_vm2, %v268_v45 }
 0x25e   :  { %982 = vmatprep.mubr.msk.bf16.mxu0 %vm189_vm2, %v269_v53 }
 0x265   :  { %983 = vmatmul.mubr.msk.bf16.gmra.mrb[12].mxu0 %vm189_vm2, %v270_v51 }
 0x330   :  { %v980_v24 = vpop.f32.mrb[8].mxu0 }
 0x331   :  { %v486_v30 = vpop.f32.mrb[9].mxu0  ;;  %v495_v34 = vadd.f32 %v980_v24, %v400_v16 }
 0x332   :  { %v487_v35 = vadd.f32 %v486_v30, %v398_v20  ;;  %v981_v37 = vpop.f32.mrb[10].mxu0 }
 0x333   :  { %v489_v39 = vpop.f32.mrb[11].mxu0  ;;  %v498_v43 = vadd.f32 %v981_v37, %v401_v36  ;;  %v525_v46 = vadd.f32 %v896_v33, %v495_v34 }
 0x334   :  { %v490_v40 = vadd.f32 %v489_v39, %v399_v32  ;;  %v523_v41 = vadd.f32 %v896_v33, %v487_v35 }
 0x335   :  { %v526_v53 = vadd.f32 %v896_v33, %v498_v43  ;;  %v538_v57 = vsel %vm531_vm7, %v525_v46, -inf }
 0x336   :  { %v532_v44 = vsel %vm531_vm7, %v523_v41, -inf  ;;  %v524_v45 = vadd.f32 %v896_v33, %v490_v40 }
 0x337   :  { %533 = vmax.xlane.f32.xlu0 %v532_v44  ;;  %v541_v62 = vsel %vm531_vm7, %v526_v53, -inf }
 0x338   :  { %v984_v49 = vpop.f32.mrb[12].mxu0  ;;  %v535_v50 = vsel %vm531_vm7, %v524_v45, -inf }
 0x339   :  { %v502_v51 = vpop.f32.mrb[13].mxu0  ;;  %536 = vmax.xlane.f32.xlu1 %v535_v50  ;;  %v511_v54 = vadd.f32 %v984_v49, %v404_v47 }
 0x33a   :  { %v503_v55 = vadd.f32 %v502_v51, %v402_v48  ;;  %v985_v56 = vpop.f32.mrb[14].mxu0 }
 0x33b   :  { %v505_v59 = vpop.f32.mrb[15].mxu0  ;;  %539 = vmax.xlane.f32.xlu0 %v538_v57  ;;  %v514_v63 = vadd.f32 %v985_v56, %v405_v58  ;;  %v529_v1 = vadd.f32 %v896_v33, %v511_v54 }
 0x33c   :  { %v506_v60 = vadd.f32 %v505_v59, %v403_v52  ;;  %v527_v61 = vadd.f32 %v896_v33, %v503_v55 }
 0x33d   :  { %v550_v3 = vsel %vm531_vm7, %v529_v1, -inf  ;;  %v530_v5 = vadd.f32 %v896_v33, %v514_v63 }
 0x33e   :  { %v544_v0 = vsel %vm531_vm7, %v527_v61, -inf  ;;  %v528_v2 = vadd.f32 %v896_v33, %v506_v60 }
 0x33f   :  { %545 = vmax.xlane.f32.xlu1 %v544_v0  ;;  %542 = vmax.xlane.f32.xlu0 %v541_v62  ;;  %v553_v6 = vsel %vm531_vm7, %v530_v5, -inf }
 0x340   :  { %v547_v4 = vsel %vm531_vm7, %v528_v2, -inf }
 0x343   :  { %551 = vmax.xlane.f32.xlu1 %v550_v3  ;;  %548 = vmax.xlane.f32.xlu0 %v547_v4 }
 0x347   :  { %554 = vmax.xlane.f32.xlu0 %v553_v6 }
 0x354   :  { %628 = vrot.lane.b32.xlu1 %v165_v19, %s1112_s0 }
 0x3c4   :  { %v534_v7 = vpop.xlane.xlu0 %533 }
 0x3c5   :  { %v556_v8 = vsub.f32 %v523_v41, %v534_v7 }
 0x3c6   :  { %v537_v9 = vpop.xlane.xlu1 %536 }
 0x3c7   :  { %v564_v14 = vmul.f32 1.442695, %v556_v8  ;;  %v557_v20 = vsub.f32 %v524_v45, %v537_v9 }
 0x3c8   :  { %v540_v10 = vpop.xlane.xlu0 %539 }
 0x3c9   :  { %v558_v12 = vsub.f32 %v525_v46, %v540_v10  ;;  %v566_v32 = vmul.f32 1.442695, %v557_v20  ;;  %v1037_v10 = vld [vmem:[%s1325_s5 + $0x8] sm:$0xff]  }
 0x3cb   :  { %v568_v16 = vmul.f32 1.442695, %v558_v12 }
 0x3cc   :  { %v546_v22 = vpop.xlane.xlu1 %545  ;;  %v543_v24 = vpop.xlane.xlu0 %542 }
 0x3cd   :  { %1056 = vpow2.f32 %v568_v16  ;;  %v559_v26 = vsub.f32 %v526_v53, %v543_v24  ;;  %v560_v28 = vsub.f32 %v527_v61, %v546_v22  ;;  %v1038_v22 = vld [vmem:[%s1325_s5 + $0x10] sm:$0xff]  }
 0x3ce   :  { %1058 = vpow2.f32 %v564_v14 }
 0x3cf   :  { %v570_v30 = vmul.f32 1.442695, %v559_v26  ;;  %v572_v17 = vmul.f32 1.442695, %v560_v28  ;;  %v1039_v28 = vld [vmem:[%s1325_s5 + $0x18] sm:$0xff]  }
 0x3d0   :  { %v552_v33 = vpop.xlane.xlu1 %551  ;;  %v549_v34 = vpop.xlane.xlu0 %548 }
 0x3d1   :  { %v562_v13 = vsub.f32 %v529_v1, %v552_v33  ;;  %1060 = vpow2.f32 %v570_v30  ;;  %v561_v35 = vsub.f32 %v528_v2, %v549_v34 }
 0x3d2   :  { %1062 = vpow2.f32 %v566_v32 }
 0x3d3   :  { %v576_v19 = vmul.f32 1.442695, %v562_v13  ;;  %v574_v41 = vmul.f32 1.442695, %v561_v35 }
 0x3d4   :  { %v629_v36 = vpop.permute.xlu1 %628  ;;  %v555_v37 = vpop.xlane.xlu0 %554 }
 0x3d5   :  { %1064 = vpow2.f32 %v576_v19  ;;  %v563_v38 = vsub.f32 %v530_v5, %v555_v37  ;;  %986 = vmatprep.subr.bf16.mxu1 %v629_v36  ;;  %v1036_v5 = vld [vmem:[%s1325_s5] sm:$0xff]  }
 0x3d6   :  { %987 = vmatpush3.bf16.msra.mxu1 %v629_v36  ;;  %1066 = vpow2.f32 %v572_v17 }
 0x3d7   :  { %v1251_v39 = vpop.eup %1056  ;;  %v578_v40 = vmul.f32 1.442695, %v563_v38 }
 0x3d8   :  { %v586_v42 = vsel %vm531_vm7, %v1251_v39, 0.0  ;;  %v1059_v43 = vpop.eup %1058 }
 0x3d9   :  { %1068 = vpow2.f32 %v578_v40  ;;  %587 = vadd.xlane.f32.xlu1 %v586_v42  ;;  %v580_v45 = vsel %vm531_vm7, %v1059_v43, 0.0  ;;  %v901_v40 = vld [vmem:[%s1326_s6] ss:$0 sm:$0xff]  ;;  %s1116_s6 = smov [#allocation2]  }
 0x3da   :  { %1070 = vpow2.f32 %v574_v41  ;;  %s867_s28 = sshll.u32 %s1116_s6, 4  ;;  %s868_s28 = int_to_ptr.vmem [resolvable:$true] %s867_s28 }
 0x3db   :  { %v1061_v44 = vpop.eup %1060  ;;  %s1088_s29 = scalar_lea.vmem %s868_s28, 256  ;;  %p1093_p1 = scmp.lt.s32.totalorder %s868_s28, %s868_s28 }
 0x3dc   :  { %v589_v46 = vsel %vm531_vm7, %v1061_v44, 0.0  ;;  %v1063_v47 = vpop.eup %1062  ;;  %p1089_p0 = scmp.ne.s32.totalorder %s868_s28, %s1088_s29  ;;  %p1094_p2 = scmp.lt.s32.totalorder %s1088_s29, %s1088_s29 }
 0x3dd   :  { %581 = vadd.xlane.f32.xlu1 %v580_v45  ;;  %590 = vadd.xlane.f32.xlu0 %v589_v46  ;;  %v583_v51 = vsel %vm531_vm7, %v1063_v47, 0.0 }
 0x3de   :  { %p1095_p3 = por %p1094_p2, %p1093_p1 }
 0x3df   :  { %v1257_v48 = vpop.eup %1064 }
 0x3e0   :  { %v598_v49 = vsel %vm531_vm7, %v1257_v48, 0.0  ;;  %v1067_v50 = vpop.eup %1066  ;;  %p1096_p4 = pnand %p1095_p3, %p1089_p0 }
 0x3e1   :  { %599 = vadd.xlane.f32.xlu1 %v598_v49  ;;  %584 = vadd.xlane.f32.xlu0 %v583_v51  ;;  %v592_v53 = vsel %vm531_vm7, %v1067_v50, 0.0 }
 0x3e3   :  { %v1069_v52 = vpop.eup %1068 }
 0x3e4   :  { %v601_v54 = vsel %vm531_vm7, %v1069_v52, 0.0  ;;  %v1071_v55 = vpop.eup %1070 }
 0x3e5   :  { %593 = vadd.xlane.f32.xlu1 %v592_v53  ;;  %602 = vadd.xlane.f32.xlu0 %v601_v54  ;;  %v595_v56 = vsel %vm531_vm7, %v1071_v55, 0.0 }
 0x3e9   :  { %596 = vadd.xlane.f32.xlu0 %v595_v56 }
 0x3f6   :  { %632 = vrot.lane.b32.xlu1 %v167_v31, %s1112_s0 }
 0x3fa   :  { %634 = vrot.lane.b32.xlu1 %v168_v29, %s1112_s0 }
 0x3ff   :  { %630 = vrot.lane.b32.xlu0 %v166_v18, %s1112_s0 }
 0x466   :  { %v588_v57 = vpop.xlane.xlu1 %587 }
 0x46a   :  { %v582_v58 = vpop.xlane.xlu1 %581  ;;  %v591_v59 = vpop.xlane.xlu0 %590 }
 0x46b   :  { %1072 = vrcp.f32 %v582_v58 }
 0x46e   :  { %v600_v60 = vpop.xlane.xlu1 %599  ;;  %v585_v61 = vpop.xlane.xlu0 %584 }
 0x46f   :  { %1074 = vrcp.f32 %v585_v61 }
 0x470   :  { %1076 = vrcp.f32 %v591_v59 }
 0x471   :  { %1078 = vrcp.f32 %v588_v57 }
 0x472   :  { %v603_v62 = vpop.xlane.xlu0 %602  ;;  %v594_v23 = vpop.xlane.xlu1 %593 }
 0x473   :  { %1080 = vrcp.f32 %v594_v23 }
 0x475   :  { %v1073_v21 = vpop.eup %1072 }
 0x476   :  { %v597_v27 = vpop.xlane.xlu0 %596  ;;  %v633_v29 = vpop.permute.xlu1 %632  ;;  %v612_v11 = vmul.f32 %v1073_v21, %v1059_v43 }
 0x477   :  { %1082 = vrcp.f32 %v597_v27 }
 0x478   :  { %1084 = vrcp.f32 %v603_v62 }
 0x479   :  { %v1075_v25 = vpop.eup %1074  ;;  %1086 = vrcp.f32 %v600_v60 }
 0x47a   :  { %v631_v31 = vpop.permute.xlu0 %630  ;;  %v613_v15 = vmul.f32 %v1075_v25, %v1063_v47  ;;  %v1077_v63 = vpop.eup %1076 }
 0x47b   :  { %988 = vmatprep.subr.bf16.mxu1 %v631_v31  ;;  %v1079_v0 = vpop.eup %1078  ;;  %v635_v2 = vpop.permute.xlu1 %634  ;;  %v615_v4 = vmul.f32 %v1077_v63, %v1061_v44 }
 0x47c   :  { %989 = vmatpush3.bf16.msra.mxu1 %v631_v31  ;;  %v620_v18 = vpack.c.bf16 %v613_v15, %v612_v11  ;;  %v614_v7 = vmul.f32 %v1079_v0, %v1251_v39 }
 0x47d   :  { %990 = vmatprep.subr.bf16.mxu1 %v633_v29  ;;  %v1081_v1 = vpop.eup %1080 }
 0x47e   :  { %994 = vmatprep.mubr.msk.bf16.mxu1 %vm531_vm7, %v620_v18  ;;  %v616_v8 = vmul.f32 %v1081_v1, %v1067_v50  ;;  %v621_v9 = vpack.c.bf16 %v615_v4, %v614_v7 }
 0x480   :  { %991 = vmatpush3.bf16.msra.mxu1 %v633_v29 }
 0x481   :  { %v1083_v3 = vpop.eup %1082  ;;  %992 = vmatprep.subr.bf16.mxu1 %v635_v2 }
 0x482   :  { %v617_v6 = vmul.f32 %v1083_v3, %v1071_v55  ;;  %v1085_v12 = vpop.eup %1084 }
 0x483   :  { %v1087_v16 = vpop.eup %1086  ;;  %v619_v20 = vmul.f32 %v1085_v12, %v1069_v52 }
 0x484   :  { %993 = vmatpush3.bf16.msra.mxu1 %v635_v2  ;;  %v622_v14 = vpack.c.bf16 %v617_v6, %v616_v8  ;;  %v618_v24 = vmul.f32 %v1087_v16, %v1257_v48 }
 0x485   :  { %1002 = vmatprep.subr.bf16.mxu1 %v1036_v5 }
 0x486   :  { %v623_v26 = vpack.c.bf16 %v619_v20, %v618_v24 }
 0x487   :  { %995 = vmatmul.mubr.msk.bf16.vlgmr.msra.gmra.mrb[8].mxu1 %vm531_vm7, %v621_v9 }
 0x488   :  { %998 = vmatprep.mubr.msk.bf16.mxu1 %vm531_vm7, %v622_v14  ;;  %1003 = vmatpush3.bf16.msra.mxu1 %v1036_v5 }
 0x489   :  { %1004 = vmatprep.subr.bf16.mxu1 %v1037_v10 }
 0x48c   :  { %1005 = vmatpush3.bf16.msra.mxu1 %v1037_v10 }
 0x48d   :  { %1006 = vmatprep.subr.bf16.mxu1 %v1038_v22 }
 0x48f   :  { %999 = vmatmul.mubr.msk.bf16.gmra.mrb[12].mxu1 %vm531_vm7, %v623_v26 }
 0x490   :  { %1007 = vmatpush3.bf16.msra.mxu1 %v1038_v22 }
 0x491   :  { %1008 = vmatprep.subr.bf16.mxu1 %v1039_v28 }
 0x494   :  { %1009 = vmatpush3.bf16.msra.mxu1 %v1039_v28 }
 0x55a   :  { %v996_v30 = vpop.f32.mrb[8].mxu1 }
 0x55b   :  { %v686_v32 = vpop.f32.mrb[9].mxu1 }
 0x55c   :  { %v997_v33 = vpop.f32.mrb[10].mxu1 }
 0x55d   :  { %v718_v34 = vpack.c.bf16 %v997_v33, %v996_v30  ;;  %v689_v13 = vpop.f32.mrb[11].mxu1 }
 0x55e   :  { %v717_v17 = vpack.c.bf16 %v689_v13, %v686_v32 }
 0x560   :  { %1010 = vmatprep.mubr.msk.bf16.mxu1 %vm531_vm7, %v717_v17 }
 0x561   :  { %1011 = vmatmul.mubr.msk.bf16.vlgmr.msra.gmra.mrb[16].mxu1 %vm531_vm7, %v718_v34 }
 0x562   :  { %v1000_v19 = vpop.f32.mrb[12].mxu1 }
 0x563   :  { %v702_v35 = vpop.f32.mrb[13].mxu1 }
 0x564   :  { %v1001_v36 = vpop.f32.mrb[14].mxu1 }
 0x565   :  { %v720_v37 = vpack.c.bf16 %v1001_v36, %v1000_v19  ;;  %v705_v38 = vpop.f32.mrb[15].mxu1 }
 0x566   :  { %v719_v39 = vpack.c.bf16 %v705_v38, %v702_v35 }
 0x568   :  { %1014 = vmatprep.mubr.msk.bf16.mxu1 %vm531_vm7, %v719_v39 }
 0x569   :  { %1015 = vmatmul.mubr.msk.bf16.gmra.mrb[20].mxu1 %vm531_vm7, %v720_v37 }
 0x634   :  { %v1012_v41 = vpop.f32.mrb[16].mxu1 }
 0x635   :  { %v806_v42 = vadd.f32 %v1012_v41, %v901_v40  ;;  %v797_v43 = vpop.f32.mrb[17].mxu1 }
 0x636   :  { %v798_v44 = vadd.f32 %v901_v40, %v797_v43  ;;  %v1013_v45 = vpop.f32.mrb[18].mxu1 }
 0x637   :  { %833 = vrot.lane.b32.xlu0 %v806_v42, %s1114_s26  ;;  %v800_v46 = vpop.f32.mrb[19].mxu1  ;;  %v809_v49 = vadd.f32 %v1013_v45, %v901_v40 }
 0x638   :  { %v801_v47 = vadd.f32 %v901_v40, %v800_v46 }
 0x63b   :  { %829 = vrot.lane.b32.xlu0 %v801_v47, %s1115_s27 }
 0x63c   :  { %v1016_v48 = vpop.f32.mrb[20].mxu1 }
 0x63d   :  { %v822_v50 = vadd.f32 %v1016_v48, %v901_v40  ;;  %v813_v51 = vpop.f32.mrb[21].mxu1 }
 0x63e   :  { %v814_v52 = vadd.f32 %v901_v40, %v813_v51  ;;  %v1017_v53 = vpop.f32.mrb[22].mxu1 }
 0x63f   :  { %837 = vrot.lane.b32.xlu0 %v809_v49, %s1112_s0  ;;  %845 = vrot.lane.b32.xlu1 %v822_v50, %s1114_s26  ;;  %v816_v54 = vpop.f32.mrb[23].mxu1  ;;  %v825_v56 = vadd.f32 %v1017_v53, %v901_v40 }
 0x640   :  { %v817_v55 = vadd.f32 %v901_v40, %v816_v54 }
 0x643   :  { %841 = vrot.lane.b32.xlu1 %v817_v55, %s1115_s27 }
 0x647   :  { %849 = vrot.lane.b32.xlu1 %v825_v56, %s1112_s0 }
 0x6a9   :  { %v834_v57 = vpop.permute.xlu0 %833 }
 0x6ad   :  { %v830_v58 = vpop.permute.xlu0 %829 }
 0x6ae   :  { %v852_v59 = vsel %vm189_vm2, %v798_v44, %v830_v58 }
 0x6af   :  { %v853_v61 = vsel %vm531_vm7, %v852_v59, %v834_v57 }
 0x6b1   :  { %v838_v60 = vpop.permute.xlu0 %837  ;;  %v846_v62 = vpop.permute.xlu1 %845 }
 0x6b2   :  { %v855_v23 = vsel %vm854_vm12, %v853_v61, %v838_v60 }
 0x6b3   :  { %859 = vst [vmem:[#allocation2] sm:$0xff] %v855_v23 }
 0x6b5   :  { %v842_v27 = vpop.permute.xlu1 %841 }
 0x6b6   :  { %v856_v21 = vsel %vm189_vm2, %v814_v52, %v842_v27 }
 0x6b7   :  { %v857_v29 = vsel %vm531_vm7, %v856_v21, %v846_v62 }
 0x6b9   :  { %v850_v25 = vpop.permute.xlu1 %849 }
 0x6ba   :  { %v858_v31 = vsel %vm854_vm12, %v857_v29, %v850_v25 }
 0x6bb   :  { %860 = vst [vmem:[#allocation2 + $0x8] sm:$0xff] %v858_v31 }
 0x6bc   :  { %1099 = shalt.err (!%p1096_p4)
}
 0x6bd   :  { %s1100_s9 = scalar_lea.hbm %s1327_s7, 256 }
 0x6be   :  { %p1101_p5 = scmp.ne.s32.totalorder %s1327_s7, %s1100_s9  ;;  %p1104_p6 = scmp.lt.u32.totalorder %s1100_s9, %s1327_s7 }
 0x6c0   :  { %p1106_p7 = pnand %p1104_p6, %p1101_p5 }
 0x6c2   :  { %1109 = shalt.err (!%p1106_p7)
}
 0x6c3   :  { %870 = dma.vmem_to_hbm [thread:$0]  %s868_s28, 256, %s1327_s7, [#allocation3]  }
 0x6c4   :  { %1110 = dma.done.wait [#allocation3], 256  }
 0x6c5   :  { %1111 = vsyncadd [#allocation3], 4294967040 }
 0x6c6   :  { %874 = vsyncpa [#allocation3], 1 }

</bundles_post_ra>
